<compile_context>
chip_gen: v7x
topology: tpu7x:2x2x1
jax: 0.10.0
libtpu: 0.0.40
codegen_flags: <defaults>
</compile_context>

<pallas_src>
import jax
import jax.numpy as jnp
from jax.experimental import pallas as pl
from jax.experimental.pallas import tpu as pltpu


def _round_up(x, m):
    return ((x + m - 1) // m) * m


def mlp_kernel(x_ref, w1_ref, b1_ref, w2_ref, b2_ref, o_ref):
    # Layer 1: x @ W1 + b1, ReLU.  f32 accumulation on the MXU; broadcast
    # bias add + max on the VPU (plenty of VALU slack in a mem-bound kernel).
    h = jnp.dot(x_ref[...], w1_ref[...], preferred_element_type=jnp.float32)
    h = jnp.maximum(h + b1_ref[...].astype(jnp.float32), 0.0)
    # Layer 2: h @ W2 + b2.  Cast h to the weight dtype (no-op for f32;
    # bf16 path feeds the MXU natively on v6e/v7x).
    y = jnp.dot(h.astype(w2_ref.dtype), w2_ref[...],
                preferred_element_type=jnp.float32)
    o_ref[...] = (y + b2_ref[...].astype(jnp.float32)).astype(o_ref.dtype)


def neural_network_forward(x, w1, b1, w2, b2, *, tb=4096):
    """Fused MLP forward: relu(x @ w1 + b1) @ w2 + b2.

    x:  [B, F_in]      (F_in = 13)
    w1: [F_in, H]      (H = 32),  b1: [H] or [1, H]
    w2: [H, F_out]     (F_out = 12), b2: [F_out] or [1, F_out]
    Any float dtype (f32 exact; bf16 halves HBM traffic, f32 accumulation).
    """
    B, f_in = x.shape
    hidden = w1.shape[1]
    f_out = w2.shape[1]
    dtype = x.dtype

    # Tiny reshapes only — no padding / materialization passes over x or out.
    b1 = jnp.reshape(b1, (1, hidden)).astype(w1.dtype)
    b2 = jnp.reshape(b2, (1, f_out)).astype(w2.dtype)

    # Batch tile: multiple of 8 sublanes, never bigger than the (8-rounded)
    # batch, and for large batches keep >= 2 grid steps so both TCs on v7x
    # get work under dimension_semantics=("parallel",).
    tb = max(8, min(tb, _round_up(B, 8)))
    tb = _round_up(tb, 8)
    if B > 256 and pl.cdiv(B, tb) < 2:
        tb = _round_up(pl.cdiv(B, 2), 8)

    grid = (pl.cdiv(B, tb),)
    out = pl.pallas_call(
        mlp_kernel,
        out_shape=jax.ShapeDtypeStruct((B, f_out), dtype),
        grid_spec=pltpu.PrefetchScalarGridSpec(
            num_scalar_prefetch=0,
            grid=grid,
            in_specs=[
                # x tile streams over the batch; last dim = full array dim (13).
                pl.BlockSpec((tb, f_in), lambda i: (i, 0)),
                # Weights / biases: constant index_maps -> VMEM-resident
                # across all grid steps (fetched once).
                pl.BlockSpec((f_in, hidden), lambda i: (0, 0)),
                pl.BlockSpec((1, hidden), lambda i: (0, 0)),
                pl.BlockSpec((hidden, f_out), lambda i: (0, 0)),
                pl.BlockSpec((1, f_out), lambda i: (0, 0)),
            ],
            # Output written at true width (12); ragged last batch block is
            # handled by Pallas (only valid rows written back).
            out_specs=pl.BlockSpec((tb, f_out), lambda i: (i, 0)),
        ),
        compiler_params=pltpu.CompilerParams(
            dimension_semantics=("parallel",),  # batch axis -> both TCs on v7x
        ),
    )(x, w1, b1, w2, b2)
    return out


def init_linear_params(key, in_features, out_features, dtype=jnp.float32):
    # Deterministic init mimicking torch.nn.Linear default:
    # U(-1/sqrt(in_features), 1/sqrt(in_features)) for weight and bias.
    kw, kb = jax.random.split(key)
    bound = 1.0 / (in_features ** 0.5)
    # Stored as [in, out] (transposed vs. torch's [out, in]) for x @ W.
    w = jax.random.uniform(kw, (in_features, out_features), dtype,
                           minval=-bound, maxval=bound)
    b = jax.random.uniform(kb, (out_features,), dtype,
                           minval=-bound, maxval=bound)
    return w, b


if __name__ == "__main__":
    key = jax.random.PRNGKey(0)
    k_x, k_l1, k_l2 = jax.random.split(key, 3)

    batch = 8
    in_features = 13
    hidden = 32
    out_features = 12

    x = jax.random.normal(k_x, (batch, in_features), jnp.float32)
    w1, b1 = init_linear_params(k_l1, in_features, hidden)
    w2, b2 = init_linear_params(k_l2, hidden, out_features)

    def ref_fn(x_, w1_, b1_, w2_, b2_):
        return jnp.maximum(x_ @ w1_ + b1_, 0.0) @ w2_ + b2_

    # 1) f32, single grid step — exact check.
    out = jax.block_until_ready(neural_network_forward(x, w1, b1, w2, b2))
    ref = ref_fn(x, w1, b1, w2, b2)
    assert out.shape == (batch, out_features)
    assert jnp.allclose(out, ref, atol=1e-4, rtol=1e-4)

    # 2) f32, multi-step ragged batch grid (40 rows, tb=16 -> 3 steps).
    xb = jax.random.normal(jax.random.PRNGKey(1), (40, in_features), jnp.float32)
    outb = jax.block_until_ready(
        neural_network_forward(xb, w1, b1, w2, b2, tb=16))
    assert outb.shape == (40, out_features)
    assert jnp.allclose(outb, ref_fn(xb, w1, b1, w2, b2), atol=1e-4, rtol=1e-4)

    # 3) bf16 I/O (halved HBM traffic on v6e/v7x), f32 accumulation in-kernel.
    cast = lambda a: a.astype(jnp.bfloat16)
    out16 = jax.block_until_ready(
        neural_network_forward(cast(x), cast(w1), cast(b1), cast(w2), cast(b2)))
    assert out16.dtype == jnp.bfloat16
    assert jnp.allclose(out16.astype(jnp.float32), ref, atol=5e-2, rtol=5e-2)

    print("KERNEL_OK")
</pallas_src>

<mosaic_0001>
module attributes {stable_mosaic.version = 11 : i64} {
  func.func @mlp_kernel(%arg0: i32, %arg1: memref<8x13xf32, #tpu.memory_space<vmem>>, %arg2: memref<13x32xf32, #tpu.memory_space<vmem>>, %arg3: memref<1x32xf32, #tpu.memory_space<vmem>>, %arg4: memref<32x12xf32, #tpu.memory_space<vmem>>, %arg5: memref<1x12xf32, #tpu.memory_space<vmem>>, %arg6: memref<8x12xf32, #tpu.memory_space<vmem>>) attributes {dimension_semantics = [#tpu.dimension_semantics<parallel>], iteration_bounds = array<i64: 1>, scalar_prefetch = 0 : i64, scratch_operands = 0 : i64, tpu.core_type = #tpu.core_type<tc>, window_params = [{transform_indices = @transform_0, window_bounds = array<i64: 8, 13>}, {pipeline_mode = #tpu.pipeline_mode<synchronous>, transform_indices = @transform_1, window_bounds = array<i64: 13, 32>}, {pipeline_mode = #tpu.pipeline_mode<synchronous>, transform_indices = @transform_2, window_bounds = array<i64: 1, 32>}, {pipeline_mode = #tpu.pipeline_mode<synchronous>, transform_indices = @transform_3, window_bounds = array<i64: 32, 12>}, {pipeline_mode = #tpu.pipeline_mode<synchronous>, transform_indices = @transform_4, window_bounds = array<i64: 1, 12>}, {transform_indices = @transform_5, window_bounds = array<i64: 8, 12>}]} {
    %c0 = arith.constant 0 : index
    %c0_0 = arith.constant 0 : index
    %0 = vector.load %arg1[%c0, %c0_0] : memref<8x13xf32, #tpu.memory_space<vmem>>, vector<8x13xf32>
    %c0_1 = arith.constant 0 : index
    %c0_2 = arith.constant 0 : index
    %1 = vector.load %arg2[%c0_1, %c0_2] : memref<13x32xf32, #tpu.memory_space<vmem>>, vector<13x32xf32>
    %cst = arith.constant dense<0.000000e+00> : vector<8x32xf32>
    %2 = tpu.matmul %0, %1, %cst {dimension_numbers = #tpu.dot_dimension_numbers<[1], [0], [0], [1], [0, 0, 1, 1], [], []>} : vector<8x13xf32>, vector<13x32xf32>, vector<8x32xf32> -> vector<8x32xf32>
    %c0_3 = arith.constant 0 : index
    %c0_4 = arith.constant 0 : index
    %3 = vector.load %arg3[%c0_3, %c0_4] : memref<1x32xf32, #tpu.memory_space<vmem>>, vector<1x32xf32>
    %4 = vector.broadcast %3 : vector<1x32xf32> to vector<8x32xf32>
    %5 = arith.addf %2, %4 : vector<8x32xf32>
    %cst_5 = arith.constant 0.000000e+00 : f32
    %6 = vector.broadcast %cst_5 : f32 to vector<8x32xf32>
    %7 = arith.maximumf %5, %6 : vector<8x32xf32>
    %c0_6 = arith.constant 0 : index
    %c0_7 = arith.constant 0 : index
    %8 = vector.load %arg4[%c0_6, %c0_7] : memref<32x12xf32, #tpu.memory_space<vmem>>, vector<32x12xf32>
    %cst_8 = arith.constant dense<0.000000e+00> : vector<8x12xf32>
    %9 = tpu.matmul %7, %8, %cst_8 {dimension_numbers = #tpu.dot_dimension_numbers<[1], [0], [0], [1], [0, 0, 1, 1], [], []>} : vector<8x32xf32>, vector<32x12xf32>, vector<8x12xf32> -> vector<8x12xf32>
    %c0_9 = arith.constant 0 : index
    %c0_10 = arith.constant 0 : index
    %10 = vector.load %arg5[%c0_9, %c0_10] : memref<1x12xf32, #tpu.memory_space<vmem>>, vector<1x12xf32>
    %11 = vector.broadcast %10 : vector<1x12xf32> to vector<8x12xf32>
    %12 = arith.addf %9, %11 : vector<8x12xf32>
    %c0_11 = arith.constant 0 : index
    %c0_12 = arith.constant 0 : index
    %13 = vector.load %arg6[%c0_11, %c0_12] : memref<8x12xf32, #tpu.memory_space<vmem>>, vector<8x12xf32>
    tpu.vector_store %arg6[%c0_11, %c0_12], %12 {strides = array<i32>} : memref<8x12xf32, #tpu.memory_space<vmem>>, vector<8x12xf32>,
    return
  }
  func.func @transform_0(%arg0: i32) -> (i32, i32) {
    %c0_i32 = arith.constant 0 : i32
    %c0_i32_0 = arith.constant 0 : i32
    return %arg0, %c0_i32 : i32, i32
  }
  func.func @transform_1(%arg0: i32) -> (i32, i32) {
    %c0_i32 = arith.constant 0 : i32
    %c0_i32_0 = arith.constant 0 : i32
    %c0_i32_1 = arith.constant 0 : i32
    return %c0_i32, %c0_i32_0 : i32, i32
  }
  func.func @transform_2(%arg0: i32) -> (i32, i32) {
    %c0_i32 = arith.constant 0 : i32
    %c0_i32_0 = arith.constant 0 : i32
    %c0_i32_1 = arith.constant 0 : i32
    return %c0_i32, %c0_i32_0 : i32, i32
  }
  func.func @transform_3(%arg0: i32) -> (i32, i32) {
    %c0_i32 = arith.constant 0 : i32
    %c0_i32_0 = arith.constant 0 : i32
    %c0_i32_1 = arith.constant 0 : i32
    return %c0_i32, %c0_i32_0 : i32, i32
  }
  func.func @transform_4(%arg0: i32) -> (i32, i32) {
    %c0_i32 = arith.constant 0 : i32
    %c0_i32_0 = arith.constant 0 : i32
    %c0_i32_1 = arith.constant 0 : i32
    return %c0_i32, %c0_i32_0 : i32, i32
  }
  func.func @transform_5(%arg0: i32) -> (i32, i32) {
    %c0_i32 = arith.constant 0 : i32
    %c0_i32_0 = arith.constant 0 : i32
    return %arg0, %c0_i32 : i32, i32
  }
}

</mosaic_0001>

<bundles_post_ra>
// kernel: tpu_custom_call.1
= control target key start
LH: loop header
LB: loop body
LE: loop exit
PB: predicated region body
PF: predicated region fallthrough
CT: control target
= control target key end

     0   :  { %vm35_vm0 = vcmask 1044480   ;;  %v281_v2 = vmov 0.0|0.0   ;;  %vm282_vm1 = vmmov 1   ;;  %vm283_vm3 = vmmov 0   ;;  %s355_s0 = inlined_call_operand.vmem [shape: f32[8,13], index: 0, kind: input, shape index: {}]   ;;  %s356_s1 = inlined_call_operand.vmem [shape: f32[13,32], index: 1, kind: input, shape index: {}]   ;;  %s357_s2 = inlined_call_operand.vmem [shape: f32[1,32], index: 2, kind: input, shape index: {}]   ;;  %s358_s3 = inlined_call_operand.vmem [shape: f32[32,12], index: 3, kind: input, shape index: {}]   ;;  %s359_s4 = inlined_call_operand.vmem [shape: f32[1,12], index: 4, kind: input, shape index: {}]   ;;  %s360_s5 = inlined_call_operand.hbm [shape: f32[8,12], index: 5, kind: output, shape index: {}]  }
   0x1   :  { %v22_v0 = vld [vmem:[%s356_s1] sm:$0xff]  ;;  %v23_v1 = vld [vmem:[%s356_s1 + $0x8] sm:$0x1f]  ;;  %242 = vmatprep.subr.bf16.mxu0 %v281_v2  ;;  %vm244_vm2 = vmpackc.low %vm35_vm0, %vm282_vm1  ;;  %246 = vmatprep.subr.bf16.mxu1 %v281_v2  ;;  %v284_v5 = vmov 0.0  }
   0x2   :  { %v243_v3 = vpack.c.bf16 %v23_v1, %v22_v0  ;;  %v110_v4 = vld [vmem:[%s358_s3] sm:$0xff]  ;;  %228 = vmatprep.mubr.msk.f32.mxu0 %vm283_vm3, %v284_v5  ;;  %v111_v6 = vld [vmem:[%s358_s3 + $0x8] sm:$0xff]  ;;  %239 = vmatprep.mubr.msk.f32.mxu1 %vm283_vm3, %v284_v5 }
   0x3   :  { %10 = vsyncpa [#allocation3], 0  ;;  %v21_v7 = vld [vmem:[%s355_s0] sm:$0xff]  ;;  %vm31_vm4 = vcmask 105472   ;;  %v247_v8 = vpack.c.bf16 %v111_v6, %v110_v4  ;;  %v112_v9 = vld [vmem:[%s358_s3 + $0x10] sm:$0xff]  ;;  %vm121_vm5 = vcmask 261120  }
   0x4   :  { %245 = vmatpush3.bf16.msk.msra.mxu0 %vm244_vm2, %v243_v3  ;;  %v113_v10 = vld [vmem:[%s358_s3 + $0x18] sm:$0xff]  ;;  %v211_v12 = vld [vmem:[%s357_s2] ss:$0 sm:$0xff]  ;;  %s285_s9 = smov [#allocation2]   ;;  %vm195_vm6 = vcmask 97280  }
   0x5   :  { %248 = vmatpush3.bf16.msra.mxu1 %v247_v8  ;;  %v250_v11 = vpack.c.bf16 %v113_v10, %v112_v9  ;;  %v214_v17 = vld [vmem:[%s359_s4] ss:$0 sm:$0xff]  ;;  %s203_s10 = sshll.u32 %s285_s9, 4  ;;  %s204_s10 = int_to_ptr.vmem [resolvable:$true] %s203_s10 }
   0x6   :  { %249 = vmatprep.subr.bf16.mxu1 %v281_v2  ;;  %s257_s3 = scalar_lea.vmem %s204_s10, 128  ;;  %p262_p1 = scmp.lt.s32.totalorder %s204_s10, %s204_s10 }
   0x7   :  { %229 = vmatmul.mubr.msk.f32.vlgmr.msra.gmra.mrb[0].mxu0 %vm31_vm4, %v21_v7  ;;  %p258_p0 = scmp.ne.s32.totalorder %s204_s10, %s257_s3  ;;  %p263_p2 = scmp.lt.s32.totalorder %s257_s3, %s257_s3 }
   0x9   :  { %251 = vmatpush3.bf16.msra.mxu1 %v250_v11  ;;  %p264_p3 = por %p263_p2, %p262_p1 }
   0xb   :  { %p265_p4 = pnand %p264_p3, %p258_p0 }
  0xda   :  { %v105_v13 = vpop.f32.mrb[0].mxu0 }
  0xdb   :  { %v106_v14 = vadd.f32 %v211_v12, %v105_v13  ;;  %v230_v15 = vpop.f32.mrb[1].mxu0 }
  0xdd   :  { %v109_v16 = vmax.f32 %v106_v14, 0.0 }
  0xdf   :  { %240 = vmatmul.mubr.msk.f32.vlgmr.msra.gmra.mrb[0].mxu1 %vm121_vm5, %v109_v16 }
 0x1b2   :  { %v191_v18 = vpop.f32.mrb[0].mxu1 }
 0x1b3   :  { %v192_v19 = vadd.f32 %v214_v17, %v191_v18  ;;  %v241_v20 = vpop.f32.mrb[1].mxu1 }
 0x1b5   :  { %196 = vst.msk [vmem:[#allocation2] sm:$0xff] %vm195_vm6, %v192_v19 }
 0x1b6   :  { %268 = shalt.err (!%p265_p4)
}
 0x1b7   :  { %s269_s12 = scalar_lea.hbm %s360_s5, 128 }
 0x1b8   :  { %p270_p5 = scmp.ne.s32.totalorder %s360_s5, %s269_s12  ;;  %p273_p6 = scmp.lt.u32.totalorder %s269_s12, %s360_s5 }
 0x1ba   :  { %p275_p7 = pnand %p273_p6, %p270_p5 }
 0x1bc   :  { %278 = shalt.err (!%p275_p7)
}
 0x1bd   :  { %206 = dma.vmem_to_hbm [thread:$0]  %s204_s10, 128, %s360_s5, [#allocation3]  }
 0x1be   :  { %279 = dma.done.wait [#allocation3], 128  }
 0x1bf   :  { %280 = vsyncadd [#allocation3], 4294967168 }
 0x1c0   :  { %210 = vsyncpa [#allocation3], 1 }

</bundles_post_ra>
